<compile_context>
chip_gen: v7x
topology: tpu7x:2x2x1
jax: 0.10.0
libtpu: 0.0.40
codegen_flags: <defaults>
</compile_context>

<pallas_src>
import jax
import jax.numpy as jnp
from jax.experimental import pallas as pl
from jax.experimental.pallas import tpu as pltpu


D_IN = 50
D_HID = 200
D_OUT = 30
D_OUT_PAD = 128  # lane-dense padded output width (unmasked stores)


def _round_up(n, m):
    return ((n + m - 1) // m) * m


def _mlp_kernel(x_ref,
                w1_ref, b1_ref,
                w2_ref, b2_ref,
                w3_ref, b3_ref,
                w4_ref, b4_ref,
                o_ref):
    # Layer 1: (TB,50)f32 -> bf16 @ (50,200)bf16 -> f32 acc, bias+ReLU in f32.
    x = x_ref[...].astype(jnp.bfloat16)
    h = jnp.dot(x, w1_ref[...], preferred_element_type=jnp.float32)
    h = jnp.maximum(h + b1_ref[...], 0.0)
    # Layer 2: (TB,200) @ (200,200) -> ReLU
    h = jnp.dot(h.astype(jnp.bfloat16), w2_ref[...],
                preferred_element_type=jnp.float32)
    h = jnp.maximum(h + b2_ref[...], 0.0)
    # Layer 3: (TB,200) @ (200,200) -> ReLU
    h = jnp.dot(h.astype(jnp.bfloat16), w3_ref[...],
                preferred_element_type=jnp.float32)
    h = jnp.maximum(h + b3_ref[...], 0.0)
    # Layer 4: (TB,200) @ (200,128 zero-padded), no activation; bf16 store.
    h = jnp.dot(h.astype(jnp.bfloat16), w4_ref[...],
                preferred_element_type=jnp.float32)
    o_ref[...] = (h + b4_ref[...]).astype(o_ref.dtype)


def prepare_params(params):
    """One-time prep: cast weights to bf16, pad layer-4 to 128 lane-dense cols."""
    w4 = (jnp.zeros((D_HID, D_OUT_PAD), jnp.float32)
          .at[:, :D_OUT].set(params["w4"]).astype(jnp.bfloat16))
    b4 = jnp.zeros((1, D_OUT_PAD), jnp.float32).at[:, :D_OUT].set(params["b4"])
    return {
        "w1": params["w1"].astype(jnp.bfloat16),
        "b1": params["b1"].astype(jnp.float32).reshape(1, D_HID),
        "w2": params["w2"].astype(jnp.bfloat16),
        "b2": params["b2"].astype(jnp.float32).reshape(1, D_HID),
        "w3": params["w3"].astype(jnp.bfloat16),
        "b3": params["b3"].astype(jnp.float32).reshape(1, D_HID),
        "w4": w4,
        "b4": b4,
    }


def net50_forward(x, prepped, *, block_b=1024):
    """x: (B, 50) float32; prepped: output of prepare_params. Returns (B, 30) f32."""
    B, f_in = x.shape
    assert f_in == D_IN, f_in

    # Batch tile: multiple of 16 (bf16 sublane packing), capped at block_b.
    # Aim for >=2 tiles when the batch permits so the "parallel" grid axis can
    # shard across both v7x TensorCores (no effect on single-TC v5e/v6e).
    TB = min(block_b, max(16, _round_up(pl.cdiv(B, 2), 16)))
    n_tiles = pl.cdiv(B, TB)  # ragged last tile is masked by Pallas

    # Cost estimate: compiler pads the 200-wide hidden/lane dims to 256
    # internally -> effective work is ~1.3x the nominal numbers.
    pad_factor = 1.3
    flops = int(pad_factor * 2 * B
                * (D_IN * D_HID + 2 * D_HID * D_HID + D_HID * D_OUT))
    bytes_accessed = int(
        pad_factor * 2 * (D_IN * D_HID + 2 * D_HID * D_HID + D_HID * D_OUT_PAD)
        + 4 * (3 * D_HID + D_OUT_PAD)   # f32 biases
        + 4 * B * D_IN                  # f32 input stream (cast in-kernel)
        + 2 * B * D_OUT_PAD             # bf16 output stream
    )

    out = pl.pallas_call(
        _mlp_kernel,
        out_shape=jax.ShapeDtypeStruct((B, D_OUT_PAD), jnp.bfloat16),
        grid=(n_tiles,),
        in_specs=[
            # activation stream: one batch tile per grid step
            pl.BlockSpec((TB, D_IN), lambda i: (i, 0)),
            # weights/biases: resident in VMEM across all grid steps
            pl.BlockSpec((D_IN, D_HID), lambda i: (0, 0)),
            pl.BlockSpec((1, D_HID), lambda i: (0, 0)),
            pl.BlockSpec((D_HID, D_HID), lambda i: (0, 0)),
            pl.BlockSpec((1, D_HID), lambda i: (0, 0)),
            pl.BlockSpec((D_HID, D_HID), lambda i: (0, 0)),
            pl.BlockSpec((1, D_HID), lambda i: (0, 0)),
            pl.BlockSpec((D_HID, D_OUT_PAD), lambda i: (0, 0)),
            pl.BlockSpec((1, D_OUT_PAD), lambda i: (0, 0)),
        ],
        out_specs=pl.BlockSpec((TB, D_OUT_PAD), lambda i: (i, 0)),
        compiler_params=pltpu.CompilerParams(
            dimension_semantics=("parallel",),
        ),
        cost_estimate=pl.CostEstimate(
            flops=flops, transcendentals=0, bytes_accessed=bytes_accessed),
    )(x, prepped["w1"], prepped["b1"], prepped["w2"], prepped["b2"],
      prepped["w3"], prepped["b3"], prepped["w4"], prepped["b4"])

    return out[:, :D_OUT].astype(jnp.float32)


def init_params(key):
    """Deterministic init mimicking PyTorch nn.Linear default (U[-1/sqrt(in), 1/sqrt(in)])."""
    dims = [(D_IN, D_HID), (D_HID, D_HID), (D_HID, D_HID), (D_HID, D_OUT)]
    params = {}
    for i, (fan_in, fan_out) in enumerate(dims, start=1):
        key, kw, kb = jax.random.split(key, 3)
        bound = 1.0 / jnp.sqrt(jnp.float32(fan_in))
        params[f"w{i}"] = jax.random.uniform(
            kw, (fan_in, fan_out), jnp.float32, -bound, bound)
        params[f"b{i}"] = jax.random.uniform(
            kb, (1, fan_out), jnp.float32, -bound, bound)
    return params


def _reference_forward(x, p):
    """Same math as the kernel (bf16 matmul inputs, f32 accumulation/elementwise)."""
    bf = jnp.bfloat16
    h = jnp.dot(x.astype(bf), p["w1"].astype(bf),
                preferred_element_type=jnp.float32) + p["b1"]
    h = jnp.maximum(h, 0.0)
    h = jnp.dot(h.astype(bf), p["w2"].astype(bf),
                preferred_element_type=jnp.float32) + p["b2"]
    h = jnp.maximum(h, 0.0)
    h = jnp.dot(h.astype(bf), p["w3"].astype(bf),
                preferred_element_type=jnp.float32) + p["b3"]
    h = jnp.maximum(h, 0.0)
    return jnp.dot(h.astype(bf), p["w4"].astype(bf),
                   preferred_element_type=jnp.float32) + p["b4"]


if __name__ == "__main__":
    key = jax.random.PRNGKey(0)
    key, kx = jax.random.split(key)
    batch = 8
    x = jax.random.normal(kx, (batch, D_IN), jnp.float32)
    params = init_params(key)
    prepped = prepare_params(params)   # hoisted one-time weight prep

    out = net50_forward(x, prepped)
    out = jax.block_until_ready(out)

    ref = _reference_forward(x, params)
    assert out.shape == (batch, D_OUT), out.shape
    # Kernel output passes through bf16 once at the final store; tolerance
    # covers that rounding (<0.4% relative).
    assert jnp.allclose(out, ref, atol=3e-2, rtol=3e-2), "mismatch vs reference"

    print("KERNEL_OK")
</pallas_src>

<mosaic_0001>
module attributes {stable_mosaic.version = 11 : i64} {
  func.func @_mlp_kernel(%arg0: i32, %arg1: memref<16x50xf32, #tpu.memory_space<vmem>>, %arg2: memref<50x200xbf16, #tpu.memory_space<vmem>>, %arg3: memref<1x200xf32, #tpu.memory_space<vmem>>, %arg4: memref<200x200xbf16, #tpu.memory_space<vmem>>, %arg5: memref<1x200xf32, #tpu.memory_space<vmem>>, %arg6: memref<200x200xbf16, #tpu.memory_space<vmem>>, %arg7: memref<1x200xf32, #tpu.memory_space<vmem>>, %arg8: memref<200x128xbf16, #tpu.memory_space<vmem>>, %arg9: memref<1x128xf32, #tpu.memory_space<vmem>>, %arg10: memref<16x128xbf16, #tpu.memory_space<vmem>>) attributes {dimension_semantics = [#tpu.dimension_semantics<parallel>], iteration_bounds = array<i64: 1>, scalar_prefetch = 0 : i64, scratch_operands = 0 : i64, tpu.core_type = #tpu.core_type<tc>, window_params = [{transform_indices = @transform_0, window_bounds = array<i64: 16, 50>}, {pipeline_mode = #tpu.pipeline_mode<synchronous>, transform_indices = @transform_1, window_bounds = array<i64: 50, 200>}, {pipeline_mode = #tpu.pipeline_mode<synchronous>, transform_indices = @transform_2, window_bounds = array<i64: 1, 200>}, {pipeline_mode = #tpu.pipeline_mode<synchronous>, transform_indices = @transform_3, window_bounds = array<i64: 200, 200>}, {pipeline_mode = #tpu.pipeline_mode<synchronous>, transform_indices = @transform_4, window_bounds = array<i64: 1, 200>}, {pipeline_mode = #tpu.pipeline_mode<synchronous>, transform_indices = @transform_5, window_bounds = array<i64: 200, 200>}, {pipeline_mode = #tpu.pipeline_mode<synchronous>, transform_indices = @transform_6, window_bounds = array<i64: 1, 200>}, {pipeline_mode = #tpu.pipeline_mode<synchronous>, transform_indices = @transform_7, window_bounds = array<i64: 200, 128>}, {pipeline_mode = #tpu.pipeline_mode<synchronous>, transform_indices = @transform_8, window_bounds = array<i64: 1, 128>}, {transform_indices = @transform_9, window_bounds = array<i64: 16, 128>}]} {
    %c0 = arith.constant 0 : index
    %c0_0 = arith.constant 0 : index
    %0 = vector.load %arg1[%c0, %c0_0] : memref<16x50xf32, #tpu.memory_space<vmem>>, vector<16x50xf32>
    %1 = arith.truncf %0 : vector<16x50xf32> to vector<16x50xbf16>
    %c0_1 = arith.constant 0 : index
    %c0_2 = arith.constant 0 : index
    %2 = vector.load %arg2[%c0_1, %c0_2] : memref<50x200xbf16, #tpu.memory_space<vmem>>, vector<50x200xbf16>
    %cst = arith.constant dense<0.000000e+00> : vector<16x200xf32>
    %3 = tpu.matmul %1, %2, %cst {dimension_numbers = #tpu.dot_dimension_numbers<[1], [0], [0], [1], [0, 0, 1, 1], [], []>} : vector<16x50xbf16>, vector<50x200xbf16>, vector<16x200xf32> -> vector<16x200xf32>
    %c0_3 = arith.constant 0 : index
    %c0_4 = arith.constant 0 : index
    %4 = vector.load %arg3[%c0_3, %c0_4] : memref<1x200xf32, #tpu.memory_space<vmem>>, vector<1x200xf32>
    %5 = vector.broadcast %4 : vector<1x200xf32> to vector<16x200xf32>
    %6 = arith.addf %3, %5 : vector<16x200xf32>
    %cst_5 = arith.constant 0.000000e+00 : f32
    %7 = vector.broadcast %cst_5 : f32 to vector<16x200xf32>
    %8 = arith.maximumf %6, %7 : vector<16x200xf32>
    %9 = arith.truncf %8 : vector<16x200xf32> to vector<16x200xbf16>
    %c0_6 = arith.constant 0 : index
    %c0_7 = arith.constant 0 : index
    %10 = vector.load %arg4[%c0_6, %c0_7] : memref<200x200xbf16, #tpu.memory_space<vmem>>, vector<200x200xbf16>
    %cst_8 = arith.constant dense<0.000000e+00> : vector<16x200xf32>
    %11 = tpu.matmul %9, %10, %cst_8 {dimension_numbers = #tpu.dot_dimension_numbers<[1], [0], [0], [1], [0, 0, 1, 1], [], []>} : vector<16x200xbf16>, vector<200x200xbf16>, vector<16x200xf32> -> vector<16x200xf32>
    %c0_9 = arith.constant 0 : index
    %c0_10 = arith.constant 0 : index
    %12 = vector.load %arg5[%c0_9, %c0_10] : memref<1x200xf32, #tpu.memory_space<vmem>>, vector<1x200xf32>
    %13 = vector.broadcast %12 : vector<1x200xf32> to vector<16x200xf32>
    %14 = arith.addf %11, %13 : vector<16x200xf32>
    %cst_11 = arith.constant 0.000000e+00 : f32
    %15 = vector.broadcast %cst_11 : f32 to vector<16x200xf32>
    %16 = arith.maximumf %14, %15 : vector<16x200xf32>
    %17 = arith.truncf %16 : vector<16x200xf32> to vector<16x200xbf16>
    %c0_12 = arith.constant 0 : index
    %c0_13 = arith.constant 0 : index
    %18 = vector.load %arg6[%c0_12, %c0_13] : memref<200x200xbf16, #tpu.memory_space<vmem>>, vector<200x200xbf16>
    %cst_14 = arith.constant dense<0.000000e+00> : vector<16x200xf32>
    %19 = tpu.matmul %17, %18, %cst_14 {dimension_numbers = #tpu.dot_dimension_numbers<[1], [0], [0], [1], [0, 0, 1, 1], [], []>} : vector<16x200xbf16>, vector<200x200xbf16>, vector<16x200xf32> -> vector<16x200xf32>
    %c0_15 = arith.constant 0 : index
    %c0_16 = arith.constant 0 : index
    %20 = vector.load %arg7[%c0_15, %c0_16] : memref<1x200xf32, #tpu.memory_space<vmem>>, vector<1x200xf32>
    %21 = vector.broadcast %20 : vector<1x200xf32> to vector<16x200xf32>
    %22 = arith.addf %19, %21 : vector<16x200xf32>
    %cst_17 = arith.constant 0.000000e+00 : f32
    %23 = vector.broadcast %cst_17 : f32 to vector<16x200xf32>
    %24 = arith.maximumf %22, %23 : vector<16x200xf32>
    %25 = arith.truncf %24 : vector<16x200xf32> to vector<16x200xbf16>
    %c0_18 = arith.constant 0 : index
    %c0_19 = arith.constant 0 : index
    %26 = vector.load %arg8[%c0_18, %c0_19] : memref<200x128xbf16, #tpu.memory_space<vmem>>, vector<200x128xbf16>
    %cst_20 = arith.constant dense<0.000000e+00> : vector<16x128xf32>
    %27 = tpu.matmul %25, %26, %cst_20 {dimension_numbers = #tpu.dot_dimension_numbers<[1], [0], [0], [1], [0, 0, 1, 1], [], []>} : vector<16x200xbf16>, vector<200x128xbf16>, vector<16x128xf32> -> vector<16x128xf32>
    %c0_21 = arith.constant 0 : index
    %c0_22 = arith.constant 0 : index
    %28 = vector.load %arg9[%c0_21, %c0_22] : memref<1x128xf32, #tpu.memory_space<vmem>>, vector<1x128xf32>
    %29 = vector.broadcast %28 : vector<1x128xf32> to vector<16x128xf32>
    %30 = arith.addf %27, %29 : vector<16x128xf32>
    %31 = arith.truncf %30 : vector<16x128xf32> to vector<16x128xbf16>
    %c0_23 = arith.constant 0 : index
    %c0_24 = arith.constant 0 : index
    %32 = vector.load %arg10[%c0_23, %c0_24] : memref<16x128xbf16, #tpu.memory_space<vmem>>, vector<16x128xbf16>
    tpu.vector_store %arg10[%c0_23, %c0_24], %31 {strides = array<i32>} : memref<16x128xbf16, #tpu.memory_space<vmem>>, vector<16x128xbf16>,
    return
  }
  func.func @transform_0(%arg0: i32) -> (i32, i32) {
    %c0_i32 = arith.constant 0 : i32
    %c0_i32_0 = arith.constant 0 : i32
    return %arg0, %c0_i32 : i32, i32
  }
  func.func @transform_1(%arg0: i32) -> (i32, i32) {
    %c0_i32 = arith.constant 0 : i32
    %c0_i32_0 = arith.constant 0 : i32
    %c0_i32_1 = arith.constant 0 : i32
    return %c0_i32, %c0_i32_0 : i32, i32
  }
  func.func @transform_2(%arg0: i32) -> (i32, i32) {
    %c0_i32 = arith.constant 0 : i32
    %c0_i32_0 = arith.constant 0 : i32
    %c0_i32_1 = arith.constant 0 : i32
    return %c0_i32, %c0_i32_0 : i32, i32
  }
  func.func @transform_3(%arg0: i32) -> (i32, i32) {
    %c0_i32 = arith.constant 0 : i32
    %c0_i32_0 = arith.constant 0 : i32
    %c0_i32_1 = arith.constant 0 : i32
    return %c0_i32, %c0_i32_0 : i32, i32
  }
  func.func @transform_4(%arg0: i32) -> (i32, i32) {
    %c0_i32 = arith.constant 0 : i32
    %c0_i32_0 = arith.constant 0 : i32
    %c0_i32_1 = arith.constant 0 : i32
    return %c0_i32, %c0_i32_0 : i32, i32
  }
  func.func @transform_5(%arg0: i32) -> (i32, i32) {
    %c0_i32 = arith.constant 0 : i32
    %c0_i32_0 = arith.constant 0 : i32
    %c0_i32_1 = arith.constant 0 : i32
    return %c0_i32, %c0_i32_0 : i32, i32
  }
  func.func @transform_6(%arg0: i32) -> (i32, i32) {
    %c0_i32 = arith.constant 0 : i32
    %c0_i32_0 = arith.constant 0 : i32
    %c0_i32_1 = arith.constant 0 : i32
    return %c0_i32, %c0_i32_0 : i32, i32
  }
  func.func @transform_7(%arg0: i32) -> (i32, i32) {
    %c0_i32 = arith.constant 0 : i32
    %c0_i32_0 = arith.constant 0 : i32
    %c0_i32_1 = arith.constant 0 : i32
    return %c0_i32, %c0_i32_0 : i32, i32
  }
  func.func @transform_8(%arg0: i32) -> (i32, i32) {
    %c0_i32 = arith.constant 0 : i32
    %c0_i32_0 = arith.constant 0 : i32
    %c0_i32_1 = arith.constant 0 : i32
    return %c0_i32, %c0_i32_0 : i32, i32
  }
  func.func @transform_9(%arg0: i32) -> (i32, i32) {
    %c0_i32 = arith.constant 0 : i32
    %c0_i32_0 = arith.constant 0 : i32
    return %arg0, %c0_i32 : i32, i32
  }
}

</mosaic_0001>

<bundles_post_ra>
// kernel: tpu_custom_call.1
= control target key start
LH: loop header
LB: loop body
LE: loop exit
PB: predicated region body
PF: predicated region fallthrough
CT: control target
= control target key end

     0   :  { %14 = vsyncpa [#allocation3], 0  ;;  %s1394_s0 = inlined_call_operand.hbm [shape: f32[8,50], index: 0, kind: input, shape index: {}]   ;;  %s1395_s1 = inlined_call_operand.hbm [shape: bf16[50,200], index: 1, kind: input, shape index: {}]   ;;  %s1396_s2 = inlined_call_operand.vmem [shape: f32[1,200], index: 2, kind: input, shape index: {}]   ;;  %s1397_s3 = inlined_call_operand.hbm [shape: bf16[200,200], index: 3, kind: input, shape index: {}]   ;;  %s1398_s4 = inlined_call_operand.vmem [shape: f32[1,200], index: 4, kind: input, shape index: {}]   ;;  %s1399_s5 = inlined_call_operand.hbm [shape: bf16[200,200], index: 5, kind: input, shape index: {}]   ;;  %s1400_s6 = inlined_call_operand.vmem [shape: f32[1,200], index: 6, kind: input, shape index: {}]   ;;  %s1401_s7 = inlined_call_operand.hbm [shape: bf16[200,128], index: 7, kind: input, shape index: {}]   ;;  %s1402_s8 = inlined_call_operand.vmem [shape: f32[1,128], index: 8, kind: input, shape index: {}]   ;;  %s1403_s9 = inlined_call_operand.hbm [shape: bf16[8,128], index: 9, kind: output, shape index: {}]  }
   0x1   :  { %15 = vsyncpa [#allocation6], 0 }
   0x2   :  { %16 = vsyncpa [#allocation9], 0 }
   0x3   :  { %17 = vsyncpa [#allocation4], 0 }
   0x4   :  { %22 = vsyncadd [#allocation3], 128  ;;  %s1185_s30 = smov [#allocation5]   ;;  %s1186_s11 = smov [#allocation8]  }
   0x5   :  { %s35_s10 = sshll.u32 %s1185_s30, 4  ;;  %s63_s12 = sshll.u32 %s1186_s11, 4  ;;  %s36_s10 = int_to_ptr.vmem [resolvable:$true] %s35_s10  ;;  %s1246_s12 = int_to_ptr.vmem [resolvable:$true] %s63_s12 }
   0x6   :  { %s1045_s15 = scalar_lea.hbm %s1395_s1, 896 }
   0x7   :  { %p1046_p0 = scmp.ne.s32.totalorder %s1395_s1, %s1045_s15  ;;  %p1049_p1 = scmp.lt.u32.totalorder %s1045_s15, %s1395_s1 }
   0x9   :  { %p1051_p2 = pnand %p1049_p1, %p1046_p0 }
   0xb   :  { %1054 = shalt.err (!%p1051_p2)
}
   0xc   :  { %s1055_s20 = scalar_lea.vmem %s36_s10, 896  ;;  %p1060_p4 = scmp.lt.s32.totalorder %s36_s10, %s36_s10 }
   0xd   :  { %p1056_p3 = scmp.ne.s32.totalorder %s36_s10, %s1055_s20  ;;  %p1061_p5 = scmp.lt.s32.totalorder %s1055_s20, %s1055_s20 }
   0xf   :  { %p1062_p6 = por %p1061_p5, %p1060_p4 }
  0x11   :  { %p1063_p7 = pnand %p1062_p6, %p1056_p3 }
  0x13   :  { %1066 = shalt.err (!%p1063_p7)
}
  0x14   :  { %s1187_s21 = smov 128   ;;  %s1188_s22 = smov 8  }
  0x15   :  { %41 = dma.hbm_to_vmem [thread:$0]  %s1395_s1, 896, %s36_s10, [#allocation6], %s1187_s21, %s1187_s21, %s1188_s22  }
  0x16   :  { %s1067_s27 = scalar_lea.hbm %s1399_s5, 3200 }
  0x17   :  { %p1068_p8 = scmp.ne.s32.totalorder %s1399_s5, %s1067_s27  ;;  %p1071_p9 = scmp.lt.u32.totalorder %s1067_s27, %s1399_s5 }
  0x19   :  { %p1073_p10 = pnand %p1071_p9, %p1068_p8 }
  0x1b   :  { %1076 = shalt.err (!%p1073_p10)
}
  0x1c   :  { %s1077_s13 = scalar_lea.vmem %s1246_s12, 3200  ;;  %p1082_p12 = scmp.lt.s32.totalorder %s1246_s12, %s1246_s12 }
  0x1d   :  { %p1078_p11 = scmp.ne.s32.totalorder %s1246_s12, %s1077_s13  ;;  %p1083_p13 = scmp.lt.s32.totalorder %s1077_s13, %s1077_s13 }
  0x1f   :  { %p1084_p0 = por %p1083_p13, %p1082_p12 }
  0x21   :  { %p1085_p1 = pnand %p1084_p0, %p1078_p11 }
  0x23   :  { %1088 = shalt.err (!%p1085_p1)
}
  0x24   :  { %69 = dma.hbm_to_vmem [thread:$0]  %s1399_s5, 3200, %s1246_s12, [#allocation9], %s1187_s21, %s1187_s21, %s1188_s22  }
  0x25   :  { %s1189_s14 = smov [#allocation2]   ;;  %s1190_s16 = smov [#allocation7]  }
  0x26   :  { %s23_s15 = sshll.u32 %s1189_s14, 4  ;;  %s49_s17 = sshll.u32 %s1190_s16, 4  ;;  %s24_s15 = int_to_ptr.vmem [resolvable:$true] %s23_s15  ;;  %s1283_s17 = int_to_ptr.vmem [resolvable:$true] %s49_s17 }
  0x27   :  { %s1089_s20 = scalar_lea.hbm %s1394_s0, 128 }
  0x28   :  { %p1090_p2 = scmp.ne.s32.totalorder %s1394_s0, %s1089_s20  ;;  %p1093_p3 = scmp.lt.u32.totalorder %s1089_s20, %s1394_s0 }
  0x2a   :  { %p1095_p4 = pnand %p1093_p3, %p1090_p2 }
  0x2c   :  { %1098 = shalt.err (!%p1095_p4)
}
  0x2d   :  { %s1099_s5 = scalar_lea.vmem %s24_s15, 128  ;;  %s1103_s12 = scalar_lea.vmem %s24_s15, 256 }
  0x2e   :  { %p1100_p5 = scmp.ne.s32.totalorder %s24_s15, %s1099_s5  ;;  %p1104_p6 = scmp.lt.s32.totalorder %s24_s15, %s24_s15 }
  0x2f   :  { %p1105_p7 = scmp.lt.s32.totalorder %s1103_s12, %s1099_s5 }
  0x31   :  { %p1106_p8 = por %p1105_p7, %p1104_p6 }
  0x33   :  { %p1107_p9 = pnand %p1106_p8, %p1100_p5 }
  0x35   :  { %1110 = shalt.err (!%p1107_p9)
}
  0x36   :  { %29 = dma.hbm_to_vmem [thread:$0]  %s1394_s0, 128, %s24_s15, [#allocation3], %s1187_s21, %s1187_s21, %s1188_s22  }
  0x37   :  { %s1111_s11 = scalar_lea.hbm %s1397_s3, 3200 }
  0x38   :  { %p1112_p10 = scmp.ne.s32.totalorder %s1397_s3, %s1111_s11  ;;  %p1115_p11 = scmp.lt.u32.totalorder %s1111_s11, %s1397_s3 }
  0x3a   :  { %p1117_p12 = pnand %p1115_p11, %p1112_p10 }
  0x3c   :  { %1120 = shalt.err (!%p1117_p12)
}
  0x3d   :  { %s1121_s16 = scalar_lea.vmem %s1283_s17, 3200  ;;  %p1126_p0 = scmp.lt.s32.totalorder %s1283_s17, %s1283_s17 }
  0x3e   :  { %p1122_p13 = scmp.ne.s32.totalorder %s1283_s17, %s1121_s16  ;;  %p1127_p1 = scmp.lt.s32.totalorder %s1121_s16, %s1121_s16 }
  0x40   :  { %p1128_p2 = por %p1127_p1, %p1126_p0 }
  0x42   :  { %p1129_p3 = pnand %p1128_p2, %p1122_p13 }
  0x44   :  { %1132 = shalt.err (!%p1129_p3)
}
  0x45   :  { %55 = dma.hbm_to_vmem [thread:$0]  %s1397_s3, 3200, %s1283_s17, [#allocation6], %s1187_s21, %s1187_s21, %s1188_s22  }
  0x46   :  { %s1191_s18 = smov [#allocation10]   ;;  %s1133_s24 = scalar_lea.hbm %s1401_s7, 1600 }
  0x47   :  { %s77_s19 = sshll.u32 %s1191_s18, 4  ;;  %p1134_p4 = scmp.ne.s32.totalorder %s1401_s7, %s1133_s24  ;;  %s78_s19 = int_to_ptr.vmem [resolvable:$true] %s77_s19 }
  0x48   :  { %p1137_p5 = scmp.lt.u32.totalorder %s1133_s24, %s1401_s7 }
  0x4a   :  { %p1139_p6 = pnand %p1137_p5, %p1134_p4 }
  0x4c   :  { %1142 = shalt.err (!%p1139_p6)
}
  0x4d   :  { %s1143_s27 = scalar_lea.vmem %s78_s19, 1600  ;;  %p1148_p8 = scmp.lt.s32.totalorder %s78_s19, %s78_s19 }
  0x4e   :  { %p1144_p7 = scmp.ne.s32.totalorder %s78_s19, %s1143_s27  ;;  %p1149_p9 = scmp.lt.s32.totalorder %s1143_s27, %s1143_s27 }
  0x50   :  { %p1150_p10 = por %p1149_p9, %p1148_p8 }
  0x52   :  { %p1151_p11 = pnand %p1150_p10, %p1144_p7 }
  0x54   :  { %1154 = shalt.err (!%p1151_p11)
}
  0x55   :  { %s1192_s3 = smov 64   ;;  %s1193_s21 = smov 4  }
  0x56   :  { %83 = dma.hbm_to_vmem [thread:$0]  %s1401_s7, 1600, %s78_s19, [#allocation9], %s1192_s3, %s1192_s3, %s1193_s21  }
  0x57   :  { %1177 = dma.done.wait [#allocation3], 256  }
  0x58   :  { %1178 = vsyncadd [#allocation3], 4294967040 }
  0x59   :  { %1179 = dma.done.wait [#allocation6], 4096  }
  0x5a   :  { %1180 = vsyncadd [#allocation6], 4294963200 }
  0x5b   :  { %1181 = dma.done.wait [#allocation9], 4800  }
  0x5c   :  { %1182 = vsyncadd [#allocation9], 4294962496  ;;  %v1194_v0 = vmov 0   ;;  %v945_v1 = vld [vmem:[#allocation5 + $0x4] ss:$8 sps:$4 sm:$0xff]   ;;  %vm163_vm0 = vcmask 1040384  }
  0x5d   :  { %202 = vmatprep.mubr.bf16.mxu0 %v1194_v0  ;;  %v947_v2 = vld [vmem:[#allocation5] ss:$8 sps:$4 sm:$0xff]   ;;  %170 = vmatprep.subr.bf16.mxu0 %v945_v1  ;;  %v948_v3 = vld [vmem:[#allocation5 + $0x14] ss:$8 sps:$4 sm:$0xff]   ;;  %v950_v4 = vld [vmem:[#allocation5 + $0x10] ss:$8 sps:$4 sm:$0xff]   ;;  %v114_v1 = vlaneseq }
  0x5e   :  { %171 = vmatpush1.bf16.msra.mxu0 %v947_v2  ;;  %v951_v5 = vld [vmem:[#allocation5 + $0x24] ss:$8 sps:$4 sm:$0xff]   ;;  %v111_v6 = vld [vmem:[#allocation5 + $0x30] sm:$0x11]  ;;  %v958_v8 = vld [vmem:[#allocation7] ss:$8 sps:$4 sm:$0xff]  }
  0x5f   :  { %172 = vmatprep.subr.bf16.mxu0 %v948_v3  ;;  %v956_v7 = vld [vmem:[#allocation7 + $0x4] ss:$8 sps:$4 sm:$0xff]   ;;  %v953_v9 = vld [vmem:[#allocation5 + $0x20] ss:$8 sps:$4 sm:$0xff]   ;;  %v959_v10 = vld [vmem:[#allocation7 + $0x14] ss:$8 sps:$4 sm:$0xff]   ;;  %v851_v11 = vcombine.high %v111_v6, %v111_v6  ;;  %v850_v12 = vcombine.low %v111_v6, %v111_v6 }
  0x60   :  { %392 = vmatprep.subr.bf16.mxu1 %v956_v7  ;;  %v961_v13 = vld [vmem:[#allocation7 + $0x10] ss:$8 sps:$4 sm:$0xff]   ;;  %v962_v14 = vld [vmem:[#allocation7 + $0x24] ss:$8 sps:$4 sm:$0xff]   ;;  %v964_v18 = vld [vmem:[#allocation7 + $0x20] ss:$8 sps:$4 sm:$0xff]  }
  0x61   :  { %393 = vmatpush1.bf16.msra.mxu1 %v958_v8  ;;  %v102_v15 = vld [vmem:[#allocation2] sm:$0xff]  ;;  %v103_v16 = vld [vmem:[#allocation2 + $0x8] sm:$0xff]  ;;  %v165_v17 = vsel %vm163_vm0, %v850_v12, 0  ;;  %vm159_vm1 = vcmask 408576   ;;  %vm385_vm2 = vcmask 1043456   ;;  %v115_v2 = vshrl.u32 %v114_v1, 7 }
  0x62   :  { %173 = vmatpush1.bf16.msra.mxu0 %v950_v4  ;;  %394 = vmatprep.subr.bf16.mxu1 %v959_v10  ;;  %v965_v19 = vld [vmem:[#allocation7 + $0x34] ss:$8 sps:$4 sm:$0xff]   ;;  %v104_v20 = vpack.c.bf16 %v103_v16, %v102_v15  ;;  %v967_v21 = vld [vmem:[#allocation7 + $0x30] ss:$8 sps:$4 sm:$0xff]   ;;  %v968_v22 = vld [vmem:[#allocation7 + $0x44] ss:$8 sps:$4 sm:$0xff]  }
  0x63   :  { %174 = vmatprep.subr.bf16.mxu0 %v951_v5  ;;  %v970_v23 = vld [vmem:[#allocation7 + $0x40] ss:$8 sps:$4 sm:$0xff]   ;;  %v971_v24 = vld [vmem:[#allocation7 + $0x54] ss:$8 sps:$4 sm:$0xff]   ;;  %v973_v25 = vld [vmem:[#allocation7 + $0x50] ss:$8 sps:$4 sm:$0xff]  }
  0x64   :  { %v974_v26 = vld [vmem:[#allocation7 + $0x64] ss:$8 sps:$4 sm:$0xff]   ;;  %v976_v27 = vld [vmem:[#allocation7 + $0x60] ss:$8 sps:$4 sm:$0xff]   ;;  %v977_v28 = vld [vmem:[#allocation7 + $0x74] ss:$8 sps:$4 sm:$0xff]  }
  0x65   :  { %395 = vmatpush1.bf16.msra.mxu1 %v961_v13  ;;  %v979_v29 = vld [vmem:[#allocation7 + $0x70] ss:$8 sps:$4 sm:$0xff]   ;;  %v980_v30 = vld [vmem:[#allocation7 + $0x84] ss:$8 sps:$4 sm:$0xff]   ;;  %v982_v31 = vld [vmem:[#allocation7 + $0x80] ss:$8 sps:$4 sm:$0xff]  }
  0x66   :  { %175 = vmatpush1.bf16.msra.mxu0 %v953_v9  ;;  %396 = vmatprep.subr.bf16.mxu1 %v962_v14  ;;  %v983_v32 = vld [vmem:[#allocation7 + $0x94] ss:$8 sps:$4 sm:$0xff]   ;;  %v985_v33 = vld [vmem:[#allocation7 + $0x90] ss:$8 sps:$4 sm:$0xff]   ;;  %v986_v34 = vld [vmem:[#allocation7 + $0xa4] ss:$8 sps:$4 sm:$0xff]  }
  0x67   :  { %852 = vmatprep.subr.msk.bf16.mxu0 %vm163_vm0, %v851_v11  ;;  %v988_v35 = vld [vmem:[#allocation7 + $0xa0] ss:$8 sps:$4 sm:$0xff]   ;;  %v989_v36 = vld [vmem:[#allocation7 + $0xb4] ss:$8 sps:$4 sm:$0xff]   ;;  %v991_v37 = vld [vmem:[#allocation7 + $0xb0] ss:$8 sps:$4 sm:$0xff]  }
  0x68   :  { %v243_v38 = vld [vmem:[#allocation7 + $0xc0] sm:$0xff]  ;;  %v994_v42 = vld [vmem:[#allocation8] ss:$8 sps:$4 sm:$0xff]   ;;  %v996_v43 = vld [vmem:[#allocation8 + $0x4] ss:$8 sps:$4 sm:$0xff]   ;;  %v1339_v3 = vsub.s32 0, %v115_v2 }
  0x69   :  { %397 = vmatpush1.bf16.msra.mxu1 %v964_v18  ;;  %v879_v39 = vcombine.high %v243_v38, %v243_v38  ;;  %v878_v40 = vcombine.low %v243_v38, %v243_v38  ;;  %v999_v44 = vld [vmem:[#allocation8 + $0x14] ss:$8 sps:$4 sm:$0xff]   ;;  %v997_v45 = vld [vmem:[#allocation8 + $0x10] ss:$8 sps:$4 sm:$0xff]   ;;  %v1002_v46 = vld [vmem:[#allocation8 + $0x24] ss:$8 sps:$4 sm:$0xff]  }
  0x6a   :  { %177 = vmatpush1.bf16.msra.mxu0 %v165_v17  ;;  %398 = vmatprep.subr.bf16.mxu1 %v965_v19  ;;  %v1000_v47 = vld [vmem:[#allocation8 + $0x20] ss:$8 sps:$4 sm:$0xff]   ;;  %v1005_v48 = vld [vmem:[#allocation8 + $0x34] ss:$8 sps:$4 sm:$0xff]   ;;  %v1003_v49 = vld [vmem:[#allocation8 + $0x30] ss:$8 sps:$4 sm:$0xff]  }
  0x6b   :  { %v387_v41 = vsel %vm385_vm2, %v878_v40, 0  ;;  %612 = vmatprep.subr.bf16.mxu0 %v996_v43  ;;  %v1008_v50 = vld [vmem:[#allocation8 + $0x44] ss:$8 sps:$4 sm:$0xff]   ;;  %v1006_v51 = vld [vmem:[#allocation8 + $0x40] ss:$8 sps:$4 sm:$0xff]   ;;  %v1344_v5 = vsub.s32 1, %v115_v2 }
  0x6c   :  { %v1011_v52 = vld [vmem:[#allocation8 + $0x54] ss:$8 sps:$4 sm:$0xff]   ;;  %v1009_v53 = vld [vmem:[#allocation8 + $0x50] ss:$8 sps:$4 sm:$0xff]   ;;  %v1014_v54 = vld [vmem:[#allocation8 + $0x64] ss:$8 sps:$4 sm:$0xff]  }
  0x6d   :  { %853 = vmatmul.mubr.msk.bf16.vlgmr.msra.gmra.mrb[0].mxu0 %vm159_vm1, %v104_v20  ;;  %399 = vmatpush1.bf16.msra.mxu1 %v967_v21  ;;  %v1012_v55 = vld [vmem:[#allocation8 + $0x60] ss:$8 sps:$4 sm:$0xff]   ;;  %v1017_v56 = vld [vmem:[#allocation8 + $0x74] ss:$8 sps:$4 sm:$0xff]   ;;  %v1015_v57 = vld [vmem:[#allocation8 + $0x70] ss:$8 sps:$4 sm:$0xff]  }
  0x6e   :  { %400 = vmatprep.subr.bf16.mxu1 %v968_v22  ;;  %613 = vmatpush1.bf16.msra.mxu0 %v994_v42  ;;  %v1020_v58 = vld [vmem:[#allocation8 + $0x84] ss:$8 sps:$4 sm:$0xff]   ;;  %v1018_v59 = vld [vmem:[#allocation8 + $0x80] ss:$8 sps:$4 sm:$0xff]   ;;  %v1023_v60 = vld [vmem:[#allocation8 + $0x94] ss:$8 sps:$4 sm:$0xff]  }
  0x6f   :  { %614 = vmatprep.subr.bf16.mxu0 %v999_v44  ;;  %v1021_v61 = vld [vmem:[#allocation8 + $0x90] ss:$8 sps:$4 sm:$0xff]   ;;  %v1026_v62 = vld [vmem:[#allocation8 + $0xa4] ss:$8 sps:$4 sm:$0xff]   ;;  %v1024_v63 = vld [vmem:[#allocation8 + $0xa0] ss:$8 sps:$4 sm:$0xff]  }
  0x70   :  { %v112_v4 = vld [vmem:[%s1396_s2] sm:$0x3]  ;;  %vm381_vm3 = vcmask 588800   ;;  %v1029_v22 = vld [vmem:[#allocation8 + $0xb4] ss:$8 sps:$4 sm:$0xff]  }
  0x71   :  { %401 = vmatpush1.bf16.msra.mxu1 %v970_v23  ;;  %v117_v6 = vrot.slane %v112_v4, %v1339_v3  ;;  %v121_v7 = vrot.slane %v112_v4, %v1344_v5  ;;  %v1027_v23 = vld [vmem:[#allocation8 + $0xb0] ss:$8 sps:$4 sm:$0xff]  }
  0x72   :  { %402 = vmatprep.subr.bf16.mxu1 %v971_v24  ;;  %615 = vmatpush1.bf16.msra.mxu0 %v997_v45  ;;  %v465_v24 = vld [vmem:[#allocation8 + $0xc0] sm:$0xff]  ;;  %v244_v38 = vld [vmem:[%s1398_s4] sm:$0x3] }
  0x73   :  { %616 = vmatprep.subr.bf16.mxu0 %v1002_v46  ;;  %v253_v40 = vrot.slane %v244_v38, %v1344_v5 }
  0x75   :  { %403 = vmatpush1.bf16.msra.mxu1 %v973_v25  ;;  %v907_v25 = vcombine.high %v465_v24, %v465_v24 }
  0x76   :  { %404 = vmatprep.subr.bf16.mxu1 %v974_v26  ;;  %617 = vmatpush1.bf16.msra.mxu0 %v1000_v47  ;;  %v906_v26 = vcombine.low %v465_v24, %v465_v24 }
  0x77   :  { %618 = vmatprep.subr.bf16.mxu0 %v1005_v48 }
  0x79   :  { %405 = vmatpush1.bf16.msra.mxu1 %v976_v27  ;;  %v607_v27 = vsel %vm385_vm2, %v906_v26, 0 }
  0x7a   :  { %406 = vmatprep.subr.bf16.mxu1 %v977_v28  ;;  %619 = vmatpush1.bf16.msra.mxu0 %v1003_v49  ;;  %v1032_v28 = vld [vmem:[#allocation10] sm:$0xff]  }
  0x7b   :  { %620 = vmatprep.subr.bf16.mxu0 %v1008_v50 }
  0x7d   :  { %407 = vmatpush1.bf16.msra.mxu1 %v979_v29  ;;  %v1033_v29 = vld [vmem:[#allocation10 + $0x8] sm:$0xff]  }
  0x7e   :  { %408 = vmatprep.subr.bf16.mxu1 %v980_v30  ;;  %621 = vmatpush1.bf16.msra.mxu0 %v1006_v51  ;;  %v1034_v30 = vld [vmem:[#allocation10 + $0x10] sm:$0xff]  }
  0x7f   :  { %622 = vmatprep.subr.bf16.mxu0 %v1011_v52 }
  0x81   :  { %409 = vmatpush1.bf16.msra.mxu1 %v982_v31  ;;  %v1035_v31 = vld [vmem:[#allocation10 + $0x18] sm:$0xff]  }
  0x82   :  { %410 = vmatprep.subr.bf16.mxu1 %v983_v32  ;;  %623 = vmatpush1.bf16.msra.mxu0 %v1009_v53  ;;  %v1036_v32 = vld [vmem:[#allocation10 + $0x20] sm:$0xff]  }
  0x83   :  { %624 = vmatprep.subr.bf16.mxu0 %v1014_v54 }
  0x85   :  { %411 = vmatpush1.bf16.msra.mxu1 %v985_v33  ;;  %v1037_v33 = vld [vmem:[#allocation10 + $0x28] sm:$0xff]  }
  0x86   :  { %412 = vmatprep.subr.bf16.mxu1 %v986_v34  ;;  %625 = vmatpush1.bf16.msra.mxu0 %v1012_v55  ;;  %v1038_v34 = vld [vmem:[#allocation10 + $0x30] sm:$0xff]  }
  0x87   :  { %626 = vmatprep.subr.bf16.mxu0 %v1017_v56  ;;  %v1042_v55 = vld [vmem:[#allocation10 + $0x50] sm:$0xff]   ;;  %v1043_v56 = vld [vmem:[#allocation10 + $0x58] sm:$0xff]  }
  0x89   :  { %413 = vmatpush1.bf16.msra.mxu1 %v988_v35  ;;  %v1039_v35 = vld [vmem:[#allocation10 + $0x38] sm:$0xff]  }
  0x8a   :  { %414 = vmatprep.subr.bf16.mxu1 %v989_v36  ;;  %627 = vmatpush1.bf16.msra.mxu0 %v1015_v57  ;;  %v1040_v36 = vld [vmem:[#allocation10 + $0x40] sm:$0xff]  }
  0x8b   :  { %628 = vmatprep.subr.bf16.mxu0 %v1020_v58  ;;  %v1044_v57 = vld [vmem:[#allocation10 + $0x60] ss:$0 sps:$4 sm:$0xff]  }
  0x8c   :  { %v772_v58 = vsel %vm385_vm2, %v1044_v57, 0 }
  0x8d   :  { %415 = vmatpush1.bf16.msra.mxu1 %v991_v37  ;;  %v1041_v37 = vld [vmem:[#allocation10 + $0x48] sm:$0xff]  }
  0x8e   :  { %880 = vmatprep.subr.msk.bf16.mxu1 %vm385_vm2, %v879_v39  ;;  %629 = vmatpush1.bf16.msra.mxu0 %v1018_v59  ;;  %v249_v39 = vrot.slane %v244_v38, %v1339_v3  ;;  %v466_v59 = vld [vmem:[%s1400_s6] sm:$0x3] }
  0x8f   :  { %630 = vmatprep.subr.bf16.mxu0 %v1023_v60  ;;  %v471_v60 = vrot.slane %v466_v59, %v1339_v3  ;;  %v910_v3 = vld [vmem:[%s1402_s8] ss:$0 sm:$0xff] }
  0x91   :  { %417 = vmatpush1.bf16.msra.mxu1 %v387_v41 }
  0x92   :  { %774 = vmatprep.subr.bf16.mxu1 %v1194_v0  ;;  %631 = vmatpush1.bf16.msra.mxu0 %v1021_v61  ;;  %v475_v61 = vrot.slane %v466_v59, %v1344_v5 }
  0x93   :  { %632 = vmatprep.subr.bf16.mxu0 %v1026_v62 }
  0x96   :  { %633 = vmatpush1.bf16.msra.mxu0 %v1024_v63 }
  0x97   :  { %634 = vmatprep.subr.bf16.mxu0 %v1029_v22 }
  0x9a   :  { %635 = vmatpush1.bf16.msra.mxu0 %v1027_v23 }
  0x9b   :  { %908 = vmatprep.subr.msk.bf16.mxu0 %vm385_vm2, %v907_v25 }
  0x9e   :  { %637 = vmatpush1.bf16.msra.mxu0 %v607_v27 }
 0x140   :  { %v204_v8 = vpop.f32.mrb[0].mxu0 }
 0x141   :  { %v205_v9 = vadd.f32 %v204_v8, %v117_v6  ;;  %v206_v10 = vpop.f32.mrb[1].mxu0 }
 0x142   :  { %v207_v11 = vadd.f32 %v206_v10, %v121_v7  ;;  %v208_v12 = vpop.f32.mrb[2].mxu0 }
 0x143   :  { %v209_v13 = vadd.f32 %v208_v12, %v117_v6  ;;  %v210_v14 = vpop.f32.mrb[3].mxu0  ;;  %v213_v16 = vmax.f32 %v205_v9, 0.0 }
 0x144   :  { %v211_v15 = vadd.f32 %v210_v14, %v121_v7  ;;  %v214_v18 = vmax.f32 %v207_v11, 0.0 }
 0x145   :  { %v215_v17 = vmax.f32 %v209_v13, 0.0 }
 0x146   :  { %v216_v19 = vmax.f32 %v211_v15, 0.0 }
 0x147   :  { %v217_v20 = vpack.c.bf16 %v215_v17, %v213_v16 }
 0x148   :  { %v218_v21 = vpack.c.bf16 %v216_v19, %v214_v18 }
 0x14a   :  { %881 = vmatprep.mubr.msk.bf16.mxu1 %vm381_vm3, %v218_v21 }
 0x14b   :  { %425 = vmatmul.mubr.bf16.vlgmr.msra.gmra.mrb[0].mxu1 %v217_v20 }
 0x14c   :  { %775 = vmatpush1.bf16.msra.mxu1 %v1032_v28 }
 0x14d   :  { %776 = vmatprep.subr.bf16.mxu1 %v1194_v0 }
 0x150   :  { %777 = vmatpush1.bf16.msra.mxu1 %v1033_v29 }
 0x151   :  { %778 = vmatprep.subr.bf16.mxu1 %v1194_v0 }
 0x154   :  { %779 = vmatpush1.bf16.msra.mxu1 %v1034_v30 }
 0x155   :  { %780 = vmatprep.subr.bf16.mxu1 %v1194_v0 }
 0x158   :  { %781 = vmatpush1.bf16.msra.mxu1 %v1035_v31 }
 0x159   :  { %782 = vmatprep.subr.bf16.mxu1 %v1194_v0 }
 0x15c   :  { %783 = vmatpush1.bf16.msra.mxu1 %v1036_v32 }
 0x15d   :  { %784 = vmatprep.subr.bf16.mxu1 %v1194_v0 }
 0x160   :  { %785 = vmatpush1.bf16.msra.mxu1 %v1037_v33 }
 0x161   :  { %786 = vmatprep.subr.bf16.mxu1 %v1194_v0 }
 0x164   :  { %787 = vmatpush1.bf16.msra.mxu1 %v1038_v34 }
 0x165   :  { %788 = vmatprep.subr.bf16.mxu1 %v1194_v0 }
 0x168   :  { %789 = vmatpush1.bf16.msra.mxu1 %v1039_v35 }
 0x169   :  { %790 = vmatprep.subr.bf16.mxu1 %v1194_v0 }
 0x16c   :  { %791 = vmatpush1.bf16.msra.mxu1 %v1040_v36 }
 0x16d   :  { %792 = vmatprep.subr.bf16.mxu1 %v1194_v0 }
 0x170   :  { %793 = vmatpush1.bf16.msra.mxu1 %v1041_v37 }
 0x171   :  { %794 = vmatprep.subr.bf16.mxu1 %v1194_v0 }
 0x174   :  { %795 = vmatpush1.bf16.msra.mxu1 %v1042_v55 }
 0x175   :  { %796 = vmatprep.subr.bf16.mxu1 %v1194_v0 }
 0x178   :  { %797 = vmatpush1.bf16.msra.mxu1 %v1043_v56 }
 0x179   :  { %798 = vmatprep.subr.bf16.mxu1 %v1194_v0 }
 0x17c   :  { %799 = vmatpush1.bf16.msra.mxu1 %v772_v58 }
 0x21e   :  { %v426_v41 = vpop.f32.mrb[0].mxu1 }
 0x21f   :  { %v427_v42 = vadd.f32 %v426_v41, %v249_v39  ;;  %v428_v43 = vpop.f32.mrb[1].mxu1 }
 0x220   :  { %v429_v44 = vadd.f32 %v428_v43, %v253_v40  ;;  %v430_v45 = vpop.f32.mrb[2].mxu1 }
 0x221   :  { %v431_v46 = vadd.f32 %v430_v45, %v249_v39  ;;  %v432_v47 = vpop.f32.mrb[3].mxu1  ;;  %v435_v49 = vmax.f32 %v427_v42, 0.0 }
 0x222   :  { %v433_v48 = vadd.f32 %v432_v47, %v253_v40  ;;  %v436_v51 = vmax.f32 %v429_v44, 0.0 }
 0x223   :  { %v437_v50 = vmax.f32 %v431_v46, 0.0 }
 0x224   :  { %v438_v52 = vmax.f32 %v433_v48, 0.0 }
 0x225   :  { %v439_v53 = vpack.c.bf16 %v437_v50, %v435_v49 }
 0x226   :  { %v440_v54 = vpack.c.bf16 %v438_v52, %v436_v51 }
 0x228   :  { %909 = vmatprep.mubr.msk.bf16.mxu0 %vm381_vm3, %v440_v54 }
 0x229   :  { %645 = vmatmul.mubr.bf16.vlgmr.msra.gmra.mrb[4].mxu0 %v439_v53 }
 0x2fc   :  { %v646_v62 = vpop.f32.mrb[4].mxu0 }
 0x2fd   :  { %v647_v63 = vadd.f32 %v646_v62, %v471_v60  ;;  %v648_v1 = vpop.f32.mrb[5].mxu0 }
 0x2fe   :  { %v649_v2 = vadd.f32 %v648_v1, %v475_v61  ;;  %v650_v4 = vpop.f32.mrb[6].mxu0 }
 0x2ff   :  { %v651_v6 = vadd.f32 %v650_v4, %v471_v60  ;;  %v652_v7 = vpop.f32.mrb[7].mxu0  ;;  %v655_v8 = vmax.f32 %v647_v63, 0.0 }
 0x300   :  { %v653_v0 = vadd.f32 %v652_v7, %v475_v61  ;;  %v656_v10 = vmax.f32 %v649_v2, 0.0 }
 0x301   :  { %v657_v9 = vmax.f32 %v651_v6, 0.0 }
 0x302   :  { %v658_v11 = vmax.f32 %v653_v0, 0.0 }
 0x303   :  { %v659_v12 = vpack.c.bf16 %v657_v9, %v655_v8 }
 0x304   :  { %v660_v13 = vpack.c.bf16 %v658_v11, %v656_v10 }
 0x306   :  { %924 = vmatprep.mubr.msk.bf16.mxu1 %vm381_vm3, %v660_v13 }
 0x307   :  { %807 = vmatmul.mubr.bf16.vlgmr.msra.gmra.mrb[4].mxu1 %v659_v12 }
 0x3da   :  { %v808_v5 = vpop.f32.mrb[4].mxu1 }
 0x3db   :  { %v810_v14 = vpop.f32.mrb[5].mxu1  ;;  %v809_v16 = vadd.f32 %v910_v3, %v808_v5 }
 0x3dc   :  { %v811_v15 = vpop.f32.mrb[6].mxu1 }
 0x3dd   :  { %v812_v17 = vadd.f32 %v910_v3, %v811_v15  ;;  %v813_v18 = vpop.f32.mrb[7].mxu1 }
 0x3df   :  { %v932_v19 = vpack.c.bf16 %v812_v17, %v809_v16 }
 0x3e1   :  { %933 = vst [vmem:[#allocation11] sm:$0xff] %v932_v19  }
 0x3e2   :  { %829 = vsyncadd [#allocation4], 64  ;;  %s1195_s13 = smov [#allocation11]  }
 0x3e3   :  { %s830_s1 = sshll.u32 %s1195_s13, 4  ;;  %s831_s1 = int_to_ptr.vmem [resolvable:$true] %s830_s1 }
 0x3e4   :  { %s1155_s10 = scalar_lea.vmem %s831_s1, 64  ;;  %s1159_s14 = scalar_lea.vmem %s831_s1, 128 }
 0x3e5   :  { %p1156_p12 = scmp.ne.s32.totalorder %s831_s1, %s1155_s10  ;;  %p1160_p13 = scmp.lt.s32.totalorder %s831_s1, %s831_s1 }
 0x3e6   :  { %p1161_p0 = scmp.lt.s32.totalorder %s1159_s14, %s1155_s10 }
 0x3e8   :  { %p1162_p1 = por %p1161_p0, %p1160_p13 }
 0x3ea   :  { %p1163_p2 = pnand %p1162_p1, %p1156_p12 }
 0x3ec   :  { %1166 = shalt.err (!%p1163_p2)
}
 0x3ed   :  { %s1167_s0 = scalar_lea.hbm %s1403_s9, 64 }
 0x3ee   :  { %p1168_p3 = scmp.ne.s32.totalorder %s1403_s9, %s1167_s0  ;;  %p1171_p4 = scmp.lt.u32.totalorder %s1167_s0, %s1403_s9 }
 0x3f0   :  { %p1173_p5 = pnand %p1171_p4, %p1168_p3 }
 0x3f2   :  { %1176 = shalt.err (!%p1173_p5)
}
 0x3f3   :  { %836 = dma.vmem_to_hbm [thread:$0]  %s831_s1, 64, %s1403_s9, [#allocation4], %s1192_s3, %s1192_s3, %s1193_s21  }
 0x3f4   :  { %1183 = dma.done.wait [#allocation4], 128  }
 0x3f5   :  { %1184 = vsyncadd [#allocation4], 4294967168 }
 0x3f6   :  { %840 = vsyncpa [#allocation3], 1 }
 0x3f7   :  { %841 = vsyncpa [#allocation6], 1 }
 0x3f8   :  { %842 = vsyncpa [#allocation9], 1 }
 0x3f9   :  { %843 = vsyncpa [#allocation4], 1 }

</bundles_post_ra>
